<compile_context>
chip_gen: v7x
topology: tpu7x:2x2x1
jax: 0.10.0
libtpu: 0.0.40
codegen_flags: <defaults>
</compile_context>

<pallas_src>
import jax
import jax.numpy as jnp
from jax.experimental import pallas as pl
from jax.experimental.pallas import tpu as pltpu

INPUT_SIZE = 32
OUTPUT_SIZE = 16
H1, H2, H3 = 200, 100, 80

# lane-aligned offsets inside the packed bias slab [b12 | b3 | b4]
_B12_OFF, _B3_OFF, _B4_OFF, _BIAS_W = 0, 128, 256, 384


def mlp_kernel(x_ref, w12_ref, w3_ref, w4_ref, bias_ref, o_ref):
    # Fused (folded) 3-matmul MLP hot path: MXU matmuls with f32 accumulation,
    # tanh on the EUP, bias adds on the VPU -- all elementwise math in f32.
    h2 = w12_ref.shape[1]
    h3 = w3_ref.shape[1]
    od = w4_ref.shape[1]

    b12 = bias_ref[:, _B12_OFF:_B12_OFF + h2]
    b3 = bias_ref[:, _B3_OFF:_B3_OFF + h3]
    b4 = bias_ref[:, _B4_OFF:_B4_OFF + od]

    x = x_ref[...]
    # folded fc1+fc2, then tanh
    h = jnp.tanh(jnp.dot(x, w12_ref[...], preferred_element_type=jnp.float32) + b12)
    # fc3 + tanh (cast activation to the weight dtype so bf16 mode feeds the MXU natively)
    h = jnp.tanh(jnp.dot(h.astype(w3_ref.dtype), w3_ref[...],
                         preferred_element_type=jnp.float32) + b3)
    # fc4 (no activation)
    out = jnp.dot(h.astype(w4_ref.dtype), w4_ref[...],
                  preferred_element_type=jnp.float32) + b4
    o_ref[...] = out.astype(o_ref.dtype)


def _round_up(n, m):
    return ((n + m - 1) // m) * m


def fully_connected_forward(x, params, *, tile_b=256, mxu_dtype=None):
    """Forward pass of FullyConnectedLayer.

    x: [B, input_size] float32.
    params: dict with w1..w4 stored as [in, out] and b1..b4 as [1, out].
    mxu_dtype: optional dtype (e.g. jnp.bfloat16) for the MXU operands (x and weights);
               biases, accumulation and tanh stay float32.
    """
    B, in_dim = x.shape
    out_dtype = x.dtype

    w1, b1 = params["w1"], params["b1"]
    w2, b2 = params["w2"], params["b2"]
    w3, b3 = params["w3"], params["b3"]
    w4, b4 = params["w4"], params["b4"]

    # --- fold fc1 + fc2 (fc1 has no nonlinearity): exact up to fp reassociation ---
    w12 = (w1 @ w2).astype(jnp.float32)        # [in, H2]
    b12 = (b1 @ w2 + b2).astype(jnp.float32)   # [1, H2]

    h2, h3, od = w12.shape[1], w3.shape[1], w4.shape[1]

    # --- single lane-aligned bias slab (one DMA descriptor instead of 3-4 tiny ones) ---
    bias = jnp.zeros((1, _BIAS_W), jnp.float32)
    bias = bias.at[:, _B12_OFF:_B12_OFF + h2].set(b12)
    bias = bias.at[:, _B3_OFF:_B3_OFF + h3].set(b3.astype(jnp.float32))
    bias = bias.at[:, _B4_OFF:_B4_OFF + od].set(b4.astype(jnp.float32))

    # --- optional bf16 MXU operands (f32 accumulation preserved in-kernel) ---
    if mxu_dtype is not None:
        x = x.astype(mxu_dtype)
        w12 = w12.astype(mxu_dtype)
        w3c = w3.astype(mxu_dtype)
        w4c = w4.astype(mxu_dtype)
    else:
        w3c, w4c = w3, w4

    # --- batch tiling: large tiles (16..512 rows), pad B to a tile multiple ---
    tile_b = max(16, min(512, _round_up(tile_b, 16)))
    tile_b = min(tile_b, _round_up(B, 16))
    padded_b = _round_up(B, tile_b)
    if padded_b != B:
        x = jnp.pad(x, ((0, padded_b - B), (0, 0)))
    grid = (padded_b // tile_b,)

    def build(const_pipeline_mode):
        def const_spec(shape):
            # Whole-array, VMEM-resident blocks with a constant index_map.
            if const_pipeline_mode is None:
                return pl.BlockSpec(shape, lambda i: (0, 0))
            return pl.BlockSpec(shape, lambda i: (0, 0),
                                pipeline_mode=const_pipeline_mode)

        return pl.pallas_call(
            mlp_kernel,
            out_shape=jax.ShapeDtypeStruct((padded_b, od), out_dtype),
            grid_spec=pltpu.PrefetchScalarGridSpec(
                num_scalar_prefetch=0,
                grid=grid,
                in_specs=[
                    pl.BlockSpec((tile_b, in_dim), lambda i: (i, 0)),  # x batch tile
                    const_spec(w12.shape),
                    const_spec(w3c.shape),
                    const_spec(w4c.shape),
                    const_spec(bias.shape),
                ],
                out_specs=pl.BlockSpec((tile_b, od), lambda i: (i, 0)),
            ),
            compiler_params=pltpu.CompilerParams(
                dimension_semantics=("parallel",),  # batch grid -> both TCs on v7x
            ),
        )

    try:
        out = build(pl.Buffered(1))(x, w12, w3c, w4c, bias)
    except Exception:
        # Fallback for jax versions that reject single-buffered constant blocks.
        out = build(None)(x, w12, w3c, w4c, bias)

    return out[:B]


def init_params(key, input_size, output_size):
    """Deterministic PyTorch-like (uniform +-1/sqrt(fan_in)) init for the 4 Linear layers."""
    sizes = [(input_size, H1), (H1, H2), (H2, H3), (H3, output_size)]
    params = {}
    keys = jax.random.split(key, 2 * len(sizes))
    for idx, (fan_in, fan_out) in enumerate(sizes):
        bound = 1.0 / jnp.sqrt(jnp.float32(fan_in))
        w = jax.random.uniform(keys[2 * idx], (fan_in, fan_out),
                               minval=-bound, maxval=bound, dtype=jnp.float32)
        b = jax.random.uniform(keys[2 * idx + 1], (1, fan_out),
                               minval=-bound, maxval=bound, dtype=jnp.float32)
        params[f"w{idx + 1}"] = w
        params[f"b{idx + 1}"] = b
    return params


def reference_forward(x, params):
    # Layer-by-layer (un-folded) pure-JAX reference matching the PyTorch module.
    h = x @ params["w1"] + params["b1"]
    h = jnp.tanh(h @ params["w2"] + params["b2"])
    h = jnp.tanh(h @ params["w3"] + params["b3"])
    return h @ params["w4"] + params["b4"]


if __name__ == "__main__":
    key = jax.random.PRNGKey(0)
    k_x, k_p = jax.random.split(key)

    B = 64
    x = jax.random.normal(k_x, (B, INPUT_SIZE), dtype=jnp.float32)
    params = init_params(k_p, INPUT_SIZE, OUTPUT_SIZE)
    ref = reference_forward(x, params)

    # f32 path (tight tolerance; the fc1/fc2 fold only reassociates f32 sums)
    out = jax.block_until_ready(fully_connected_forward(x, params))
    assert out.shape == (B, OUTPUT_SIZE)
    assert jnp.allclose(out, ref, atol=1e-4, rtol=1e-4), "f32 mismatch vs reference"

    # bf16 MXU-operand path (f32 accumulation / tanh), looser tolerance
    out_bf16 = jax.block_until_ready(
        fully_connected_forward(x, params, mxu_dtype=jnp.bfloat16))
    assert out_bf16.shape == (B, OUTPUT_SIZE)
    assert jnp.allclose(out_bf16, ref, atol=5e-2, rtol=5e-2), "bf16 mismatch vs reference"

    # ragged batch (not a multiple of the tile) exercises wrapper-side padding + 2-step grid
    B2 = 50
    out_ragged = jax.block_until_ready(
        fully_connected_forward(x[:B2], params, tile_b=32))
    assert out_ragged.shape == (B2, OUTPUT_SIZE)
    assert jnp.allclose(out_ragged, ref[:B2], atol=1e-4, rtol=1e-4), "ragged batch mismatch"

    print("KERNEL_OK")
</pallas_src>

<mosaic_0001>
module attributes {stable_mosaic.version = 11 : i64} {
  func.func @mlp_kernel(%arg0: i32, %arg1: memref<64x32xf32, #tpu.memory_space<vmem>>, %arg2: memref<32x100xf32, #tpu.memory_space<vmem>>, %arg3: memref<100x80xf32, #tpu.memory_space<vmem>>, %arg4: memref<80x16xf32, #tpu.memory_space<vmem>>, %arg5: memref<1x384xf32, #tpu.memory_space<vmem>>, %arg6: memref<64x16xf32, #tpu.memory_space<vmem>>) attributes {dimension_semantics = [#tpu.dimension_semantics<parallel>], iteration_bounds = array<i64: 1>, scalar_prefetch = 0 : i64, scratch_operands = 0 : i64, tpu.core_type = #tpu.core_type<tc>, window_params = [{transform_indices = @transform_0, window_bounds = array<i64: 64, 32>}, {pipeline_mode = #tpu.pipeline_mode<synchronous>, transform_indices = @transform_1, window_bounds = array<i64: 32, 100>}, {pipeline_mode = #tpu.pipeline_mode<synchronous>, transform_indices = @transform_2, window_bounds = array<i64: 100, 80>}, {pipeline_mode = #tpu.pipeline_mode<synchronous>, transform_indices = @transform_3, window_bounds = array<i64: 80, 16>}, {pipeline_mode = #tpu.pipeline_mode<synchronous>, transform_indices = @transform_4, window_bounds = array<i64: 1, 384>}, {transform_indices = @transform_5, window_bounds = array<i64: 64, 16>}]} {
    %c0 = arith.constant 0 : index
    %c0_0 = arith.constant 0 : index
    %0 = vector.load %arg5[%c0, %c0_0] : memref<1x384xf32, #tpu.memory_space<vmem>>, vector<1x100xf32>
    %c0_1 = arith.constant 0 : index
    %c128 = arith.constant 128 : index
    %1 = vector.load %arg5[%c0_1, %c128] : memref<1x384xf32, #tpu.memory_space<vmem>>, vector<1x80xf32>
    %c0_2 = arith.constant 0 : index
    %c256 = arith.constant 256 : index
    %2 = vector.load %arg5[%c0_2, %c256] : memref<1x384xf32, #tpu.memory_space<vmem>>, vector<1x16xf32>
    %c0_3 = arith.constant 0 : index
    %c0_4 = arith.constant 0 : index
    %3 = vector.load %arg1[%c0_3, %c0_4] : memref<64x32xf32, #tpu.memory_space<vmem>>, vector<64x32xf32>
    %c0_5 = arith.constant 0 : index
    %c0_6 = arith.constant 0 : index
    %4 = vector.load %arg2[%c0_5, %c0_6] : memref<32x100xf32, #tpu.memory_space<vmem>>, vector<32x100xf32>
    %cst = arith.constant dense<0.000000e+00> : vector<64x100xf32>
    %5 = tpu.matmul %3, %4, %cst {dimension_numbers = #tpu.dot_dimension_numbers<[1], [0], [0], [1], [0, 0, 1, 1], [], []>} : vector<64x32xf32>, vector<32x100xf32>, vector<64x100xf32> -> vector<64x100xf32>
    %6 = vector.broadcast %0 : vector<1x100xf32> to vector<64x100xf32>
    %7 = arith.addf %5, %6 : vector<64x100xf32>
    %8 = math.tanh %7 : vector<64x100xf32>
    %c0_7 = arith.constant 0 : index
    %c0_8 = arith.constant 0 : index
    %9 = vector.load %arg3[%c0_7, %c0_8] : memref<100x80xf32, #tpu.memory_space<vmem>>, vector<100x80xf32>
    %cst_9 = arith.constant dense<0.000000e+00> : vector<64x80xf32>
    %10 = tpu.matmul %8, %9, %cst_9 {dimension_numbers = #tpu.dot_dimension_numbers<[1], [0], [0], [1], [0, 0, 1, 1], [], []>} : vector<64x100xf32>, vector<100x80xf32>, vector<64x80xf32> -> vector<64x80xf32>
    %11 = vector.broadcast %1 : vector<1x80xf32> to vector<64x80xf32>
    %12 = arith.addf %10, %11 : vector<64x80xf32>
    %13 = math.tanh %12 : vector<64x80xf32>
    %c0_10 = arith.constant 0 : index
    %c0_11 = arith.constant 0 : index
    %14 = vector.load %arg4[%c0_10, %c0_11] : memref<80x16xf32, #tpu.memory_space<vmem>>, vector<80x16xf32>
    %cst_12 = arith.constant dense<0.000000e+00> : vector<64x16xf32>
    %15 = tpu.matmul %13, %14, %cst_12 {dimension_numbers = #tpu.dot_dimension_numbers<[1], [0], [0], [1], [0, 0, 1, 1], [], []>} : vector<64x80xf32>, vector<80x16xf32>, vector<64x16xf32> -> vector<64x16xf32>
    %16 = vector.broadcast %2 : vector<1x16xf32> to vector<64x16xf32>
    %17 = arith.addf %15, %16 : vector<64x16xf32>
    %c0_13 = arith.constant 0 : index
    %c0_14 = arith.constant 0 : index
    %18 = vector.load %arg6[%c0_13, %c0_14] : memref<64x16xf32, #tpu.memory_space<vmem>>, vector<64x16xf32>
    tpu.vector_store %arg6[%c0_13, %c0_14], %17 {strides = array<i32>} : memref<64x16xf32, #tpu.memory_space<vmem>>, vector<64x16xf32>,
    return
  }
  func.func @transform_0(%arg0: i32) -> (i32, i32) {
    %c0_i32 = arith.constant 0 : i32
    %c0_i32_0 = arith.constant 0 : i32
    return %arg0, %c0_i32 : i32, i32
  }
  func.func @transform_1(%arg0: i32) -> (i32, i32) {
    %c0_i32 = arith.constant 0 : i32
    %c0_i32_0 = arith.constant 0 : i32
    %c0_i32_1 = arith.constant 0 : i32
    return %c0_i32, %c0_i32_0 : i32, i32
  }
  func.func @transform_2(%arg0: i32) -> (i32, i32) {
    %c0_i32 = arith.constant 0 : i32
    %c0_i32_0 = arith.constant 0 : i32
    %c0_i32_1 = arith.constant 0 : i32
    return %c0_i32, %c0_i32_0 : i32, i32
  }
  func.func @transform_3(%arg0: i32) -> (i32, i32) {
    %c0_i32 = arith.constant 0 : i32
    %c0_i32_0 = arith.constant 0 : i32
    %c0_i32_1 = arith.constant 0 : i32
    return %c0_i32, %c0_i32_0 : i32, i32
  }
  func.func @transform_4(%arg0: i32) -> (i32, i32) {
    %c0_i32 = arith.constant 0 : i32
    %c0_i32_0 = arith.constant 0 : i32
    %c0_i32_1 = arith.constant 0 : i32
    return %c0_i32, %c0_i32_0 : i32, i32
  }
  func.func @transform_5(%arg0: i32) -> (i32, i32) {
    %c0_i32 = arith.constant 0 : i32
    %c0_i32_0 = arith.constant 0 : i32
    return %arg0, %c0_i32 : i32, i32
  }
}

module attributes {stable_mosaic.version = 11 : i64} {
  func.func @mlp_kernel(%arg0: i32, %arg1: memref<64x32xf32, #tpu.memory_space<vmem>>, %arg2: memref<32x100xf32, #tpu.memory_space<vmem>>, %arg3: memref<100x80xf32, #tpu.memory_space<vmem>>, %arg4: memref<80x16xf32, #tpu.memory_space<vmem>>, %arg5: memref<1x384xf32, #tpu.memory_space<vmem>>, %arg6: memref<64x16xf32, #tpu.memory_space<vmem>>) attributes {dimension_semantics = [#tpu.dimension_semantics<parallel>], iteration_bounds = array<i64: 1>, scalar_prefetch = 0 : i64, scratch_operands = 0 : i64, tpu.core_type = #tpu.core_type<tc>, window_params = [{transform_indices = @transform_0, window_bounds = array<i64: 64, 32>}, {pipeline_mode = #tpu.pipeline_mode<synchronous>, transform_indices = @transform_1, window_bounds = array<i64: 32, 100>}, {pipeline_mode = #tpu.pipeline_mode<synchronous>, transform_indices = @transform_2, window_bounds = array<i64: 100, 80>}, {pipeline_mode = #tpu.pipeline_mode<synchronous>, transform_indices = @transform_3, window_bounds = array<i64: 80, 16>}, {pipeline_mode = #tpu.pipeline_mode<synchronous>, transform_indices = @transform_4, window_bounds = array<i64: 1, 384>}, {transform_indices = @transform_5, window_bounds = array<i64: 64, 16>}]} {
    %c0 = arith.constant 0 : index
    %c0_0 = arith.constant 0 : index
    %0 = vector.load %arg5[%c0, %c0_0] : memref<1x384xf32, #tpu.memory_space<vmem>>, vector<1x100xf32>
    %c0_1 = arith.constant 0 : index
    %c128 = arith.constant 128 : index
    %1 = vector.load %arg5[%c0_1, %c128] : memref<1x384xf32, #tpu.memory_space<vmem>>, vector<1x80xf32>
    %c0_2 = arith.constant 0 : index
    %c256 = arith.constant 256 : index
    %2 = vector.load %arg5[%c0_2, %c256] : memref<1x384xf32, #tpu.memory_space<vmem>>, vector<1x16xf32>
    %c0_3 = arith.constant 0 : index
    %c0_4 = arith.constant 0 : index
    %3 = vector.load %arg1[%c0_3, %c0_4] : memref<64x32xf32, #tpu.memory_space<vmem>>, vector<64x32xf32>
    %c0_5 = arith.constant 0 : index
    %c0_6 = arith.constant 0 : index
    %4 = vector.load %arg2[%c0_5, %c0_6] : memref<32x100xf32, #tpu.memory_space<vmem>>, vector<32x100xf32>
    %cst = arith.constant dense<0.000000e+00> : vector<64x100xf32>
    %5 = tpu.matmul %3, %4, %cst {dimension_numbers = #tpu.dot_dimension_numbers<[1], [0], [0], [1], [0, 0, 1, 1], [], []>} : vector<64x32xf32>, vector<32x100xf32>, vector<64x100xf32> -> vector<64x100xf32>
    %6 = vector.broadcast %0 : vector<1x100xf32> to vector<64x100xf32>
    %7 = arith.addf %5, %6 : vector<64x100xf32>
    %8 = math.tanh %7 : vector<64x100xf32>
    %c0_7 = arith.constant 0 : index
    %c0_8 = arith.constant 0 : index
    %9 = vector.load %arg3[%c0_7, %c0_8] : memref<100x80xf32, #tpu.memory_space<vmem>>, vector<100x80xf32>
    %cst_9 = arith.constant dense<0.000000e+00> : vector<64x80xf32>
    %10 = tpu.matmul %8, %9, %cst_9 {dimension_numbers = #tpu.dot_dimension_numbers<[1], [0], [0], [1], [0, 0, 1, 1], [], []>} : vector<64x100xf32>, vector<100x80xf32>, vector<64x80xf32> -> vector<64x80xf32>
    %11 = vector.broadcast %1 : vector<1x80xf32> to vector<64x80xf32>
    %12 = arith.addf %10, %11 : vector<64x80xf32>
    %13 = math.tanh %12 : vector<64x80xf32>
    %c0_10 = arith.constant 0 : index
    %c0_11 = arith.constant 0 : index
    %14 = vector.load %arg4[%c0_10, %c0_11] : memref<80x16xf32, #tpu.memory_space<vmem>>, vector<80x16xf32>
    %cst_12 = arith.constant dense<0.000000e+00> : vector<64x16xf32>
    %15 = tpu.matmul %13, %14, %cst_12 {dimension_numbers = #tpu.dot_dimension_numbers<[1], [0], [0], [1], [0, 0, 1, 1], [], []>} : vector<64x80xf32>, vector<80x16xf32>, vector<64x16xf32> -> vector<64x16xf32>
    %16 = vector.broadcast %2 : vector<1x16xf32> to vector<64x16xf32>
    %17 = arith.addf %15, %16 : vector<64x16xf32>
    %c0_13 = arith.constant 0 : index
    %c0_14 = arith.constant 0 : index
    %18 = vector.load %arg6[%c0_13, %c0_14] : memref<64x16xf32, #tpu.memory_space<vmem>>, vector<64x16xf32>
    tpu.vector_store %arg6[%c0_13, %c0_14], %17 {strides = array<i32>} : memref<64x16xf32, #tpu.memory_space<vmem>>, vector<64x16xf32>,
    return
  }
  func.func @transform_0(%arg0: i32) -> (i32, i32) {
    %c0_i32 = arith.constant 0 : i32
    %c0_i32_0 = arith.constant 0 : i32
    return %arg0, %c0_i32 : i32, i32
  }
  func.func @transform_1(%arg0: i32) -> (i32, i32) {
    %c0_i32 = arith.constant 0 : i32
    %c0_i32_0 = arith.constant 0 : i32
    %c0_i32_1 = arith.constant 0 : i32
    return %c0_i32, %c0_i32_0 : i32, i32
  }
  func.func @transform_2(%arg0: i32) -> (i32, i32) {
    %c0_i32 = arith.constant 0 : i32
    %c0_i32_0 = arith.constant 0 : i32
    %c0_i32_1 = arith.constant 0 : i32
    return %c0_i32, %c0_i32_0 : i32, i32
  }
  func.func @transform_3(%arg0: i32) -> (i32, i32) {
    %c0_i32 = arith.constant 0 : i32
    %c0_i32_0 = arith.constant 0 : i32
    %c0_i32_1 = arith.constant 0 : i32
    return %c0_i32, %c0_i32_0 : i32, i32
  }
  func.func @transform_4(%arg0: i32) -> (i32, i32) {
    %c0_i32 = arith.constant 0 : i32
    %c0_i32_0 = arith.constant 0 : i32
    %c0_i32_1 = arith.constant 0 : i32
    return %c0_i32, %c0_i32_0 : i32, i32
  }
  func.func @transform_5(%arg0: i32) -> (i32, i32) {
    %c0_i32 = arith.constant 0 : i32
    %c0_i32_0 = arith.constant 0 : i32
    return %arg0, %c0_i32 : i32, i32
  }
}

</mosaic_0001>

<bundles_post_ra>
// kernel: tpu_custom_call.1
= control target key start
LH: loop header
LB: loop body
LE: loop exit
PB: predicated region body
PF: predicated region fallthrough
CT: control target
= control target key end

     0   :  { %vm41_vm0 = vcmask 261120   ;;  %vm223_vm1 = vcmask 1043456   ;;  %vm198_vm2 = vcmask 818176   ;;  %vm356_vm3 = vcmask 654336   ;;  %s952_s1 = inlined_call_operand.vmem [shape: f32[32,100], index: 1, kind: input, shape index: {}]   ;;  %s953_s0 = inlined_call_operand.vmem [shape: f32[64,32], index: 0, kind: input, shape index: {}]   ;;  %s954_s2 = inlined_call_operand.vmem [shape: f32[100,80], index: 2, kind: input, shape index: {}]   ;;  %s955_s3 = inlined_call_operand.vmem [shape: f32[80,16], index: 3, kind: input, shape index: {}]   ;;  %s956_s4 = inlined_call_operand.vmem [shape: f32[1,384], index: 4, kind: input, shape index: {}]   ;;  %s957_s5 = inlined_call_operand.vmem [shape: f32[64,16], index: 5, kind: output, shape index: {}]  }
   0x1   :  { %v31_v0 = vld [vmem:[%s952_s1] sm:$0xff]  ;;  %v32_v1 = vld [vmem:[%s952_s1 + $0x8] sm:$0xff]  ;;  %v33_v2 = vld [vmem:[%s952_s1 + $0x10] sm:$0xff]  ;;  %vm486_vm4 = vcmask 130048  }
   0x2   :  { %v668_v3 = vpack.c.bf16 %v32_v1, %v31_v0  ;;  %v34_v4 = vld [vmem:[%s952_s1 + $0x18] sm:$0xff]  ;;  %v23_v5 = vld [vmem:[%s953_s0] sm:$0xff]  ;;  %v180_v8 = vld [vmem:[%s954_s2 + $0x8] sm:$0xff] }
   0x3   :  { %v672_v6 = vpack.c.bf16 %v34_v4, %v33_v2  ;;  %586 = vmatprep.mubr.msk.f32.mxu0 %vm41_vm0, %v23_v5  ;;  %v179_v7 = vld [vmem:[%s954_s2] sm:$0xff]  ;;  %v181_v9 = vld [vmem:[%s954_s2 + $0x10] sm:$0xff]  ;;  %v182_v11 = vld [vmem:[%s954_s2 + $0x18] sm:$0xff] }
   0x4   :  { %669 = vmatprep.subr.bf16.mxu0 %v668_v3  ;;  %v676_v10 = vpack.c.bf16 %v180_v8, %v179_v7  ;;  %v680_v12 = vpack.c.bf16 %v182_v11, %v181_v9  ;;  %v183_v13 = vld [vmem:[%s954_s2 + $0x20] sm:$0xff]  ;;  %v184_v14 = vld [vmem:[%s954_s2 + $0x28] sm:$0xff]  ;;  %v25_v16 = vld [vmem:[%s953_s0 + $0x10] sm:$0xff] }
   0x5   :  { %671 = vmatpush3.bf16.msra.mxu0 %v668_v3  ;;  %v24_v15 = vld [vmem:[%s953_s0 + $0x8] sm:$0xff]  ;;  %v684_v17 = vpack.c.bf16 %v184_v14, %v183_v13  ;;  %v26_v18 = vld [vmem:[%s953_s0 + $0x18] sm:$0xff]  ;;  %v27_v19 = vld [vmem:[%s953_s0 + $0x20] sm:$0xff] }
   0x6   :  { %673 = vmatprep.subr.bf16.mxu0 %v672_v6  ;;  %677 = vmatprep.subr.bf16.mxu1 %v676_v10  ;;  %v28_v20 = vld [vmem:[%s953_s0 + $0x28] sm:$0xff]  ;;  %v29_v21 = vld [vmem:[%s953_s0 + $0x30] sm:$0xff]  ;;  %v30_v22 = vld [vmem:[%s953_s0 + $0x38] sm:$0xff] }
   0x7   :  { %679 = vmatpush3.bf16.msra.mxu1 %v676_v10  ;;  %v185_v23 = vld [vmem:[%s954_s2 + $0x30] sm:$0xff]  ;;  %v186_v24 = vld [vmem:[%s954_s2 + $0x38] sm:$0xff]  ;;  %v187_v26 = vld [vmem:[%s954_s2 + $0x40] sm:$0xff] }
   0x8   :  { %681 = vmatprep.subr.bf16.mxu1 %v680_v12  ;;  %v688_v25 = vpack.c.bf16 %v186_v24, %v185_v23  ;;  %v188_v27 = vld [vmem:[%s954_s2 + $0x48] sm:$0xff]  ;;  %v189_v29 = vld [vmem:[%s954_s2 + $0x50] sm:$0xff]  ;;  %v190_v30 = vld [vmem:[%s954_s2 + $0x58] sm:$0xff] }
   0x9   :  { %675 = vmatpush3.bf16.msra.mxu0 %v672_v6  ;;  %v692_v28 = vpack.c.bf16 %v188_v27, %v187_v26  ;;  %v696_v31 = vpack.c.bf16 %v190_v30, %v189_v29  ;;  %v191_v32 = vld [vmem:[%s954_s2 + $0x60] sm:$0xf]  ;;  %v341_v34 = vld [vmem:[%s955_s3 + $0x8] sm:$0xff]  ;;  %v342_v61 = vld [vmem:[%s955_s3 + $0x10] sm:$0xff] }
   0xa   :  { %v340_v33 = vld [vmem:[%s955_s3] sm:$0xff]  ;;  %v343_v62 = vld [vmem:[%s955_s3 + $0x18] sm:$0xff]  ;;  %v345_v1 = vld [vmem:[%s955_s3 + $0x28] sm:$0xff] }
   0xb   :  { %683 = vmatpush3.bf16.msra.mxu1 %v680_v12  ;;  %v700_v35 = vpack.c.bf16 %v341_v34, %v340_v33  ;;  %v499_v36 = vld [vmem:[%s956_s4] ss:$0 sm:$0xff]  ;;  %v704_v63 = vpack.c.bf16 %v343_v62, %v342_v61  ;;  %v346_v3 = vld [vmem:[%s955_s3 + $0x30] sm:$0xff]  ;;  %v347_v4 = vld [vmem:[%s955_s3 + $0x38] sm:$0xff] }
   0xc   :  { %587 = vmatmul.mubr.msk.f32.vlgmr.msra.gmra.mrb[0].mxu0 %vm41_vm0, %v24_v15  ;;  %685 = vmatprep.subr.bf16.mxu1 %v684_v17  ;;  %v344_v0 = vld [vmem:[%s955_s3 + $0x20] sm:$0xff]  ;;  %v712_v5 = vpack.c.bf16 %v347_v4, %v346_v3  ;;  %v349_v7 = vld [vmem:[%s955_s3 + $0x48] sm:$0xff] }
   0xd   :  { %589 = vmatprep.mubr.msk.f32.mxu0 %vm41_vm0, %v25_v16  ;;  %701 = vmatprep.subr.bf16.mxu0 %v700_v35  ;;  %v708_v2 = vpack.c.bf16 %v345_v1, %v344_v0  ;;  %v348_v6 = vld [vmem:[%s955_s3 + $0x40] sm:$0xff] }
   0xe   :  { %703 = vmatpush3.bf16.msra.mxu0 %v700_v35  ;;  %v716_v8 = vpack.c.bf16 %v349_v7, %v348_v6  ;;  %v508_v9 = vld [vmem:[%s956_s4 + $0x1] ss:$0 sm:$0xff]  ;;  %v518_v34 = vld [vmem:[%s956_s4 + $0x2] ss:$0 sm:$0xff] }
   0xf   :  { %687 = vmatpush3.bf16.msra.mxu1 %v684_v17  ;;  %705 = vmatprep.subr.bf16.mxu0 %v704_v63 }
  0x10   :  { %590 = vmatmul.mubr.msk.f32.gmra.mrb[2].mxu0 %vm41_vm0, %v26_v18  ;;  %689 = vmatprep.subr.bf16.mxu1 %v688_v25 }
  0x11   :  { %592 = vmatprep.mubr.msk.f32.mxu0 %vm41_vm0, %v27_v19 }
  0x12   :  { %707 = vmatpush3.bf16.msra.mxu0 %v704_v63 }
  0x13   :  { %691 = vmatpush3.bf16.msra.mxu1 %v688_v25  ;;  %709 = vmatprep.subr.bf16.mxu0 %v708_v2 }
  0x14   :  { %593 = vmatmul.mubr.msk.f32.gmra.mrb[4].mxu0 %vm41_vm0, %v28_v20  ;;  %693 = vmatprep.subr.bf16.mxu1 %v692_v28 }
  0x15   :  { %595 = vmatprep.mubr.msk.f32.mxu0 %vm41_vm0, %v29_v21 }
  0x16   :  { %711 = vmatpush3.bf16.msra.mxu0 %v708_v2 }
  0x17   :  { %695 = vmatpush3.bf16.msra.mxu1 %v692_v28  ;;  %713 = vmatprep.subr.bf16.mxu0 %v712_v5 }
  0x18   :  { %596 = vmatmul.mubr.msk.f32.gmra.mrb[6].mxu0 %vm41_vm0, %v30_v22  ;;  %697 = vmatprep.subr.bf16.mxu1 %v696_v31 }
  0x1a   :  { %715 = vmatpush3.bf16.msra.mxu0 %v712_v5 }
  0x1b   :  { %699 = vmatpush3.bf16.msra.mxu1 %v696_v31  ;;  %717 = vmatprep.subr.bf16.mxu0 %v716_v8 }
  0x1c   :  { %622 = vmatprep.subr.msk.mxu1 %vm223_vm1, %v191_v32 }
  0x1e   :  { %719 = vmatpush3.bf16.msra.mxu0 %v716_v8 }
  0x1f   :  { %623 = vmatpush3.msk.msra.mxu1 %vm223_vm1, %v191_v32 }
  0xdf   :  { %v588_v37 = vpop.f32.mrb[0].mxu0 }
  0xe0   :  { %v138_v38 = vadd.f32 %v588_v37, %v499_v36  ;;  %v132_v39 = vpop.f32.mrb[1].mxu0 }
  0xe1   :  { %v133_v40 = vadd.f32 %v499_v36, %v132_v39 }
  0xe3   :  { %720 = vtanh.f32 %v133_v40  ;;  %v591_v41 = vpop.f32.mrb[2].mxu0 }
  0xe4   :  { %722 = vtanh.f32 %v138_v38  ;;  %v148_v42 = vadd.f32 %v591_v41, %v499_v36  ;;  %v142_v43 = vpop.f32.mrb[3].mxu0 }
  0xe5   :  { %v143_v44 = vadd.f32 %v499_v36, %v142_v43 }
  0xe7   :  { %724 = vtanh.f32 %v143_v44  ;;  %v594_v45 = vpop.f32.mrb[4].mxu0 }
  0xe8   :  { %726 = vtanh.f32 %v148_v42  ;;  %v158_v46 = vadd.f32 %v594_v45, %v499_v36  ;;  %v152_v47 = vpop.f32.mrb[5].mxu0 }
  0xe9   :  { %v153_v48 = vadd.f32 %v499_v36, %v152_v47 }
  0xeb   :  { %728 = vtanh.f32 %v153_v48  ;;  %v597_v49 = vpop.f32.mrb[6].mxu0 }
  0xec   :  { %730 = vtanh.f32 %v158_v46  ;;  %v168_v50 = vadd.f32 %v597_v49, %v499_v36  ;;  %v162_v51 = vpop.f32.mrb[7].mxu0 }
  0xed   :  { %v721_v52 = vpop.eup %720  ;;  %v163_v53 = vadd.f32 %v499_v36, %v162_v51 }
  0xee   :  { %v723_v54 = vpop.eup %722  ;;  %624 = vmatprep.mubr.msk.f32.mxu1 %vm198_vm2, %v721_v52 }
  0xef   :  { %732 = vtanh.f32 %v163_v53  ;;  %625 = vmatmul.mubr.msk.f32.vlgmr.msra.gmra.mrb[0].mxu1 %vm198_vm2, %v723_v54 }
  0xf0   :  { %734 = vtanh.f32 %v168_v50 }
  0xf1   :  { %v725_v55 = vpop.eup %724 }
  0xf2   :  { %v727_v56 = vpop.eup %726  ;;  %627 = vmatprep.mubr.msk.f32.mxu1 %vm198_vm2, %v725_v55 }
  0xf3   :  { %628 = vmatmul.mubr.msk.f32.gmra.mrb[2].mxu1 %vm198_vm2, %v727_v56 }
  0xf5   :  { %v729_v57 = vpop.eup %728 }
  0xf6   :  { %v731_v58 = vpop.eup %730  ;;  %630 = vmatprep.mubr.msk.f32.mxu1 %vm198_vm2, %v729_v57 }
  0xf7   :  { %631 = vmatmul.mubr.msk.f32.gmra.mrb[4].mxu1 %vm198_vm2, %v731_v58 }
  0xf9   :  { %v733_v59 = vpop.eup %732 }
  0xfa   :  { %v735_v60 = vpop.eup %734  ;;  %633 = vmatprep.mubr.msk.f32.mxu1 %vm198_vm2, %v733_v59 }
  0xfb   :  { %634 = vmatmul.mubr.msk.f32.gmra.mrb[6].mxu1 %vm198_vm2, %v735_v60 }
 0x1c2   :  { %v626_v10 = vpop.f32.mrb[0].mxu1 }
 0x1c3   :  { %v299_v11 = vadd.f32 %v626_v10, %v508_v9  ;;  %v293_v12 = vpop.f32.mrb[1].mxu1 }
 0x1c4   :  { %v294_v13 = vadd.f32 %v508_v9, %v293_v12 }
 0x1c6   :  { %736 = vtanh.f32 %v294_v13  ;;  %v629_v14 = vpop.f32.mrb[2].mxu1 }
 0x1c7   :  { %738 = vtanh.f32 %v299_v11  ;;  %v309_v15 = vadd.f32 %v629_v14, %v508_v9  ;;  %v303_v16 = vpop.f32.mrb[3].mxu1 }
 0x1c8   :  { %v304_v17 = vadd.f32 %v508_v9, %v303_v16 }
 0x1ca   :  { %740 = vtanh.f32 %v304_v17  ;;  %v632_v18 = vpop.f32.mrb[4].mxu1 }
 0x1cb   :  { %742 = vtanh.f32 %v309_v15  ;;  %v319_v19 = vadd.f32 %v632_v18, %v508_v9  ;;  %v313_v20 = vpop.f32.mrb[5].mxu1 }
 0x1cc   :  { %v314_v21 = vadd.f32 %v508_v9, %v313_v20 }
 0x1ce   :  { %744 = vtanh.f32 %v314_v21  ;;  %v635_v22 = vpop.f32.mrb[6].mxu1 }
 0x1cf   :  { %746 = vtanh.f32 %v319_v19  ;;  %v329_v23 = vadd.f32 %v635_v22, %v508_v9  ;;  %v323_v24 = vpop.f32.mrb[7].mxu1 }
 0x1d0   :  { %v737_v25 = vpop.eup %736  ;;  %v324_v26 = vadd.f32 %v508_v9, %v323_v24 }
 0x1d1   :  { %v739_v27 = vpop.eup %738  ;;  %656 = vmatprep.mubr.msk.f32.mxu0 %vm356_vm3, %v737_v25 }
 0x1d2   :  { %748 = vtanh.f32 %v324_v26  ;;  %657 = vmatmul.mubr.msk.f32.vlgmr.msra.gmra.mrb[8].mxu0 %vm356_vm3, %v739_v27 }
 0x1d3   :  { %750 = vtanh.f32 %v329_v23 }
 0x1d4   :  { %v741_v28 = vpop.eup %740 }
 0x1d5   :  { %v743_v29 = vpop.eup %742  ;;  %659 = vmatprep.mubr.msk.f32.mxu0 %vm356_vm3, %v741_v28 }
 0x1d6   :  { %660 = vmatmul.mubr.msk.f32.gmra.mrb[10].mxu0 %vm356_vm3, %v743_v29 }
 0x1d8   :  { %v745_v30 = vpop.eup %744 }
 0x1d9   :  { %v747_v31 = vpop.eup %746  ;;  %662 = vmatprep.mubr.msk.f32.mxu0 %vm356_vm3, %v745_v30 }
 0x1da   :  { %663 = vmatmul.mubr.msk.f32.gmra.mrb[12].mxu0 %vm356_vm3, %v747_v31 }
 0x1dc   :  { %v749_v32 = vpop.eup %748 }
 0x1dd   :  { %v751_v33 = vpop.eup %750  ;;  %665 = vmatprep.mubr.msk.f32.mxu0 %vm356_vm3, %v749_v32 }
 0x1de   :  { %666 = vmatmul.mubr.msk.f32.gmra.mrb[14].mxu0 %vm356_vm3, %v751_v33 }
 0x2a5   :  { %v658_v35 = vpop.f32.mrb[8].mxu0 }
 0x2a6   :  { %v453_v36 = vadd.f32 %v658_v35, %v518_v34  ;;  %v447_v37 = vpop.f32.mrb[9].mxu0 }
 0x2a7   :  { %v448_v38 = vadd.f32 %v518_v34, %v447_v37 }
 0x2a8   :  { %488 = vst.msk [vmem:[%s957_s5 + $0x8] sm:$0xff] %vm486_vm4, %v453_v36 }
 0x2a9   :  { %487 = vst.msk [vmem:[%s957_s5] sm:$0xff] %vm486_vm4, %v448_v38  ;;  %v661_v39 = vpop.f32.mrb[10].mxu0 }
 0x2aa   :  { %v463_v40 = vadd.f32 %v661_v39, %v518_v34  ;;  %v457_v41 = vpop.f32.mrb[11].mxu0 }
 0x2ab   :  { %v458_v42 = vadd.f32 %v518_v34, %v457_v41 }
 0x2ac   :  { %490 = vst.msk [vmem:[%s957_s5 + $0x18] sm:$0xff] %vm486_vm4, %v463_v40 }
 0x2ad   :  { %489 = vst.msk [vmem:[%s957_s5 + $0x10] sm:$0xff] %vm486_vm4, %v458_v42  ;;  %v664_v43 = vpop.f32.mrb[12].mxu0 }
 0x2ae   :  { %v473_v44 = vadd.f32 %v664_v43, %v518_v34  ;;  %v467_v45 = vpop.f32.mrb[13].mxu0 }
 0x2af   :  { %v468_v46 = vadd.f32 %v518_v34, %v467_v45 }
 0x2b0   :  { %492 = vst.msk [vmem:[%s957_s5 + $0x28] sm:$0xff] %vm486_vm4, %v473_v44 }
 0x2b1   :  { %491 = vst.msk [vmem:[%s957_s5 + $0x20] sm:$0xff] %vm486_vm4, %v468_v46  ;;  %v667_v47 = vpop.f32.mrb[14].mxu0 }
 0x2b2   :  { %v483_v48 = vadd.f32 %v667_v47, %v518_v34  ;;  %v477_v49 = vpop.f32.mrb[15].mxu0 }
 0x2b3   :  { %v478_v50 = vadd.f32 %v518_v34, %v477_v49 }
 0x2b4   :  { %494 = vst.msk [vmem:[%s957_s5 + $0x38] sm:$0xff] %vm486_vm4, %v483_v48 }
 0x2b5   :  { %493 = vst.msk [vmem:[%s957_s5 + $0x30] sm:$0xff] %vm486_vm4, %v478_v50 }

// kernel: tpu_custom_call.1
= control target key start
LH: loop header
LB: loop body
LE: loop exit
PB: predicated region body
PF: predicated region fallthrough
CT: control target
= control target key end

     0   :  { %vm41_vm0 = vcmask 261120   ;;  %vm223_vm1 = vcmask 1043456   ;;  %vm198_vm2 = vcmask 818176   ;;  %vm356_vm3 = vcmask 654336   ;;  %s952_s1 = inlined_call_operand.vmem [shape: f32[32,100], index: 1, kind: input, shape index: {}]   ;;  %s953_s0 = inlined_call_operand.vmem [shape: f32[64,32], index: 0, kind: input, shape index: {}]   ;;  %s954_s2 = inlined_call_operand.vmem [shape: f32[100,80], index: 2, kind: input, shape index: {}]   ;;  %s955_s3 = inlined_call_operand.vmem [shape: f32[80,16], index: 3, kind: input, shape index: {}]   ;;  %s956_s4 = inlined_call_operand.vmem [shape: f32[1,384], index: 4, kind: input, shape index: {}]   ;;  %s957_s5 = inlined_call_operand.vmem [shape: f32[64,16], index: 5, kind: output, shape index: {}]  }
   0x1   :  { %v31_v0 = vld [vmem:[%s952_s1] sm:$0xff]  ;;  %v32_v1 = vld [vmem:[%s952_s1 + $0x8] sm:$0xff]  ;;  %v33_v2 = vld [vmem:[%s952_s1 + $0x10] sm:$0xff]  ;;  %vm486_vm4 = vcmask 130048  }
   0x2   :  { %v668_v3 = vpack.c.bf16 %v32_v1, %v31_v0  ;;  %v34_v4 = vld [vmem:[%s952_s1 + $0x18] sm:$0xff]  ;;  %v23_v5 = vld [vmem:[%s953_s0] sm:$0xff]  ;;  %v180_v8 = vld [vmem:[%s954_s2 + $0x8] sm:$0xff] }
   0x3   :  { %v672_v6 = vpack.c.bf16 %v34_v4, %v33_v2  ;;  %586 = vmatprep.mubr.msk.f32.mxu0 %vm41_vm0, %v23_v5  ;;  %v179_v7 = vld [vmem:[%s954_s2] sm:$0xff]  ;;  %v181_v9 = vld [vmem:[%s954_s2 + $0x10] sm:$0xff]  ;;  %v182_v11 = vld [vmem:[%s954_s2 + $0x18] sm:$0xff] }
   0x4   :  { %669 = vmatprep.subr.bf16.mxu0 %v668_v3  ;;  %v676_v10 = vpack.c.bf16 %v180_v8, %v179_v7  ;;  %v680_v12 = vpack.c.bf16 %v182_v11, %v181_v9  ;;  %v183_v13 = vld [vmem:[%s954_s2 + $0x20] sm:$0xff]  ;;  %v184_v14 = vld [vmem:[%s954_s2 + $0x28] sm:$0xff]  ;;  %v25_v16 = vld [vmem:[%s953_s0 + $0x10] sm:$0xff] }
   0x5   :  { %671 = vmatpush3.bf16.msra.mxu0 %v668_v3  ;;  %v24_v15 = vld [vmem:[%s953_s0 + $0x8] sm:$0xff]  ;;  %v684_v17 = vpack.c.bf16 %v184_v14, %v183_v13  ;;  %v26_v18 = vld [vmem:[%s953_s0 + $0x18] sm:$0xff]  ;;  %v27_v19 = vld [vmem:[%s953_s0 + $0x20] sm:$0xff] }
   0x6   :  { %673 = vmatprep.subr.bf16.mxu0 %v672_v6  ;;  %677 = vmatprep.subr.bf16.mxu1 %v676_v10  ;;  %v28_v20 = vld [vmem:[%s953_s0 + $0x28] sm:$0xff]  ;;  %v29_v21 = vld [vmem:[%s953_s0 + $0x30] sm:$0xff]  ;;  %v30_v22 = vld [vmem:[%s953_s0 + $0x38] sm:$0xff] }
   0x7   :  { %679 = vmatpush3.bf16.msra.mxu1 %v676_v10  ;;  %v185_v23 = vld [vmem:[%s954_s2 + $0x30] sm:$0xff]  ;;  %v186_v24 = vld [vmem:[%s954_s2 + $0x38] sm:$0xff]  ;;  %v187_v26 = vld [vmem:[%s954_s2 + $0x40] sm:$0xff] }
   0x8   :  { %681 = vmatprep.subr.bf16.mxu1 %v680_v12  ;;  %v688_v25 = vpack.c.bf16 %v186_v24, %v185_v23  ;;  %v188_v27 = vld [vmem:[%s954_s2 + $0x48] sm:$0xff]  ;;  %v189_v29 = vld [vmem:[%s954_s2 + $0x50] sm:$0xff]  ;;  %v190_v30 = vld [vmem:[%s954_s2 + $0x58] sm:$0xff] }
   0x9   :  { %675 = vmatpush3.bf16.msra.mxu0 %v672_v6  ;;  %v692_v28 = vpack.c.bf16 %v188_v27, %v187_v26  ;;  %v696_v31 = vpack.c.bf16 %v190_v30, %v189_v29  ;;  %v191_v32 = vld [vmem:[%s954_s2 + $0x60] sm:$0xf]  ;;  %v341_v34 = vld [vmem:[%s955_s3 + $0x8] sm:$0xff]  ;;  %v342_v61 = vld [vmem:[%s955_s3 + $0x10] sm:$0xff] }
   0xa   :  { %v340_v33 = vld [vmem:[%s955_s3] sm:$0xff]  ;;  %v343_v62 = vld [vmem:[%s955_s3 + $0x18] sm:$0xff]  ;;  %v345_v1 = vld [vmem:[%s955_s3 + $0x28] sm:$0xff] }
   0xb   :  { %683 = vmatpush3.bf16.msra.mxu1 %v680_v12  ;;  %v700_v35 = vpack.c.bf16 %v341_v34, %v340_v33  ;;  %v499_v36 = vld [vmem:[%s956_s4] ss:$0 sm:$0xff]  ;;  %v704_v63 = vpack.c.bf16 %v343_v62, %v342_v61  ;;  %v346_v3 = vld [vmem:[%s955_s3 + $0x30] sm:$0xff]  ;;  %v347_v4 = vld [vmem:[%s955_s3 + $0x38] sm:$0xff] }
   0xc   :  { %587 = vmatmul.mubr.msk.f32.vlgmr.msra.gmra.mrb[0].mxu0 %vm41_vm0, %v24_v15  ;;  %685 = vmatprep.subr.bf16.mxu1 %v684_v17  ;;  %v344_v0 = vld [vmem:[%s955_s3 + $0x20] sm:$0xff]  ;;  %v712_v5 = vpack.c.bf16 %v347_v4, %v346_v3  ;;  %v349_v7 = vld [vmem:[%s955_s3 + $0x48] sm:$0xff] }
   0xd   :  { %589 = vmatprep.mubr.msk.f32.mxu0 %vm41_vm0, %v25_v16  ;;  %701 = vmatprep.subr.bf16.mxu0 %v700_v35  ;;  %v708_v2 = vpack.c.bf16 %v345_v1, %v344_v0  ;;  %v348_v6 = vld [vmem:[%s955_s3 + $0x40] sm:$0xff] }
   0xe   :  { %703 = vmatpush3.bf16.msra.mxu0 %v700_v35  ;;  %v716_v8 = vpack.c.bf16 %v349_v7, %v348_v6  ;;  %v508_v9 = vld [vmem:[%s956_s4 + $0x1] ss:$0 sm:$0xff]  ;;  %v518_v34 = vld [vmem:[%s956_s4 + $0x2] ss:$0 sm:$0xff] }
   0xf   :  { %687 = vmatpush3.bf16.msra.mxu1 %v684_v17  ;;  %705 = vmatprep.subr.bf16.mxu0 %v704_v63 }
  0x10   :  { %590 = vmatmul.mubr.msk.f32.gmra.mrb[2].mxu0 %vm41_vm0, %v26_v18  ;;  %689 = vmatprep.subr.bf16.mxu1 %v688_v25 }
  0x11   :  { %592 = vmatprep.mubr.msk.f32.mxu0 %vm41_vm0, %v27_v19 }
  0x12   :  { %707 = vmatpush3.bf16.msra.mxu0 %v704_v63 }
  0x13   :  { %691 = vmatpush3.bf16.msra.mxu1 %v688_v25  ;;  %709 = vmatprep.subr.bf16.mxu0 %v708_v2 }
  0x14   :  { %593 = vmatmul.mubr.msk.f32.gmra.mrb[4].mxu0 %vm41_vm0, %v28_v20  ;;  %693 = vmatprep.subr.bf16.mxu1 %v692_v28 }
  0x15   :  { %595 = vmatprep.mubr.msk.f32.mxu0 %vm41_vm0, %v29_v21 }
  0x16   :  { %711 = vmatpush3.bf16.msra.mxu0 %v708_v2 }
  0x17   :  { %695 = vmatpush3.bf16.msra.mxu1 %v692_v28  ;;  %713 = vmatprep.subr.bf16.mxu0 %v712_v5 }
  0x18   :  { %596 = vmatmul.mubr.msk.f32.gmra.mrb[6].mxu0 %vm41_vm0, %v30_v22  ;;  %697 = vmatprep.subr.bf16.mxu1 %v696_v31 }
  0x1a   :  { %715 = vmatpush3.bf16.msra.mxu0 %v712_v5 }
  0x1b   :  { %699 = vmatpush3.bf16.msra.mxu1 %v696_v31  ;;  %717 = vmatprep.subr.bf16.mxu0 %v716_v8 }
  0x1c   :  { %622 = vmatprep.subr.msk.mxu1 %vm223_vm1, %v191_v32 }
  0x1e   :  { %719 = vmatpush3.bf16.msra.mxu0 %v716_v8 }
  0x1f   :  { %623 = vmatpush3.msk.msra.mxu1 %vm223_vm1, %v191_v32 }
  0xdf   :  { %v588_v37 = vpop.f32.mrb[0].mxu0 }
  0xe0   :  { %v138_v38 = vadd.f32 %v588_v37, %v499_v36  ;;  %v132_v39 = vpop.f32.mrb[1].mxu0 }
  0xe1   :  { %v133_v40 = vadd.f32 %v499_v36, %v132_v39 }
  0xe3   :  { %720 = vtanh.f32 %v133_v40  ;;  %v591_v41 = vpop.f32.mrb[2].mxu0 }
  0xe4   :  { %722 = vtanh.f32 %v138_v38  ;;  %v148_v42 = vadd.f32 %v591_v41, %v499_v36  ;;  %v142_v43 = vpop.f32.mrb[3].mxu0 }
  0xe5   :  { %v143_v44 = vadd.f32 %v499_v36, %v142_v43 }
  0xe7   :  { %724 = vtanh.f32 %v143_v44  ;;  %v594_v45 = vpop.f32.mrb[4].mxu0 }
  0xe8   :  { %726 = vtanh.f32 %v148_v42  ;;  %v158_v46 = vadd.f32 %v594_v45, %v499_v36  ;;  %v152_v47 = vpop.f32.mrb[5].mxu0 }
  0xe9   :  { %v153_v48 = vadd.f32 %v499_v36, %v152_v47 }
  0xeb   :  { %728 = vtanh.f32 %v153_v48  ;;  %v597_v49 = vpop.f32.mrb[6].mxu0 }
  0xec   :  { %730 = vtanh.f32 %v158_v46  ;;  %v168_v50 = vadd.f32 %v597_v49, %v499_v36  ;;  %v162_v51 = vpop.f32.mrb[7].mxu0 }
  0xed   :  { %v721_v52 = vpop.eup %720  ;;  %v163_v53 = vadd.f32 %v499_v36, %v162_v51 }
  0xee   :  { %v723_v54 = vpop.eup %722  ;;  %624 = vmatprep.mubr.msk.f32.mxu1 %vm198_vm2, %v721_v52 }
  0xef   :  { %732 = vtanh.f32 %v163_v53  ;;  %625 = vmatmul.mubr.msk.f32.vlgmr.msra.gmra.mrb[0].mxu1 %vm198_vm2, %v723_v54 }
  0xf0   :  { %734 = vtanh.f32 %v168_v50 }
  0xf1   :  { %v725_v55 = vpop.eup %724 }
  0xf2   :  { %v727_v56 = vpop.eup %726  ;;  %627 = vmatprep.mubr.msk.f32.mxu1 %vm198_vm2, %v725_v55 }
  0xf3   :  { %628 = vmatmul.mubr.msk.f32.gmra.mrb[2].mxu1 %vm198_vm2, %v727_v56 }
  0xf5   :  { %v729_v57 = vpop.eup %728 }
  0xf6   :  { %v731_v58 = vpop.eup %730  ;;  %630 = vmatprep.mubr.msk.f32.mxu1 %vm198_vm2, %v729_v57 }
  0xf7   :  { %631 = vmatmul.mubr.msk.f32.gmra.mrb[4].mxu1 %vm198_vm2, %v731_v58 }
  0xf9   :  { %v733_v59 = vpop.eup %732 }
  0xfa   :  { %v735_v60 = vpop.eup %734  ;;  %633 = vmatprep.mubr.msk.f32.mxu1 %vm198_vm2, %v733_v59 }
  0xfb   :  { %634 = vmatmul.mubr.msk.f32.gmra.mrb[6].mxu1 %vm198_vm2, %v735_v60 }
 0x1c2   :  { %v626_v10 = vpop.f32.mrb[0].mxu1 }
 0x1c3   :  { %v299_v11 = vadd.f32 %v626_v10, %v508_v9  ;;  %v293_v12 = vpop.f32.mrb[1].mxu1 }
 0x1c4   :  { %v294_v13 = vadd.f32 %v508_v9, %v293_v12 }
 0x1c6   :  { %736 = vtanh.f32 %v294_v13  ;;  %v629_v14 = vpop.f32.mrb[2].mxu1 }
 0x1c7   :  { %738 = vtanh.f32 %v299_v11  ;;  %v309_v15 = vadd.f32 %v629_v14, %v508_v9  ;;  %v303_v16 = vpop.f32.mrb[3].mxu1 }
 0x1c8   :  { %v304_v17 = vadd.f32 %v508_v9, %v303_v16 }
 0x1ca   :  { %740 = vtanh.f32 %v304_v17  ;;  %v632_v18 = vpop.f32.mrb[4].mxu1 }
 0x1cb   :  { %742 = vtanh.f32 %v309_v15  ;;  %v319_v19 = vadd.f32 %v632_v18, %v508_v9  ;;  %v313_v20 = vpop.f32.mrb[5].mxu1 }
 0x1cc   :  { %v314_v21 = vadd.f32 %v508_v9, %v313_v20 }
 0x1ce   :  { %744 = vtanh.f32 %v314_v21  ;;  %v635_v22 = vpop.f32.mrb[6].mxu1 }
 0x1cf   :  { %746 = vtanh.f32 %v319_v19  ;;  %v329_v23 = vadd.f32 %v635_v22, %v508_v9  ;;  %v323_v24 = vpop.f32.mrb[7].mxu1 }
 0x1d0   :  { %v737_v25 = vpop.eup %736  ;;  %v324_v26 = vadd.f32 %v508_v9, %v323_v24 }
 0x1d1   :  { %v739_v27 = vpop.eup %738  ;;  %656 = vmatprep.mubr.msk.f32.mxu0 %vm356_vm3, %v737_v25 }
 0x1d2   :  { %748 = vtanh.f32 %v324_v26  ;;  %657 = vmatmul.mubr.msk.f32.vlgmr.msra.gmra.mrb[8].mxu0 %vm356_vm3, %v739_v27 }
 0x1d3   :  { %750 = vtanh.f32 %v329_v23 }
 0x1d4   :  { %v741_v28 = vpop.eup %740 }
 0x1d5   :  { %v743_v29 = vpop.eup %742  ;;  %659 = vmatprep.mubr.msk.f32.mxu0 %vm356_vm3, %v741_v28 }
 0x1d6   :  { %660 = vmatmul.mubr.msk.f32.gmra.mrb[10].mxu0 %vm356_vm3, %v743_v29 }
 0x1d8   :  { %v745_v30 = vpop.eup %744 }
 0x1d9   :  { %v747_v31 = vpop.eup %746  ;;  %662 = vmatprep.mubr.msk.f32.mxu0 %vm356_vm3, %v745_v30 }
 0x1da   :  { %663 = vmatmul.mubr.msk.f32.gmra.mrb[12].mxu0 %vm356_vm3, %v747_v31 }
 0x1dc   :  { %v749_v32 = vpop.eup %748 }
 0x1dd   :  { %v751_v33 = vpop.eup %750  ;;  %665 = vmatprep.mubr.msk.f32.mxu0 %vm356_vm3, %v749_v32 }
 0x1de   :  { %666 = vmatmul.mubr.msk.f32.gmra.mrb[14].mxu0 %vm356_vm3, %v751_v33 }
 0x2a5   :  { %v658_v35 = vpop.f32.mrb[8].mxu0 }
 0x2a6   :  { %v453_v36 = vadd.f32 %v658_v35, %v518_v34  ;;  %v447_v37 = vpop.f32.mrb[9].mxu0 }
 0x2a7   :  { %v448_v38 = vadd.f32 %v518_v34, %v447_v37 }
 0x2a8   :  { %488 = vst.msk [vmem:[%s957_s5 + $0x8] sm:$0xff] %vm486_vm4, %v453_v36 }
 0x2a9   :  { %487 = vst.msk [vmem:[%s957_s5] sm:$0xff] %vm486_vm4, %v448_v38  ;;  %v661_v39 = vpop.f32.mrb[10].mxu0 }
 0x2aa   :  { %v463_v40 = vadd.f32 %v661_v39, %v518_v34  ;;  %v457_v41 = vpop.f32.mrb[11].mxu0 }
 0x2ab   :  { %v458_v42 = vadd.f32 %v518_v34, %v457_v41 }
 0x2ac   :  { %490 = vst.msk [vmem:[%s957_s5 + $0x18] sm:$0xff] %vm486_vm4, %v463_v40 }
 0x2ad   :  { %489 = vst.msk [vmem:[%s957_s5 + $0x10] sm:$0xff] %vm486_vm4, %v458_v42  ;;  %v664_v43 = vpop.f32.mrb[12].mxu0 }
 0x2ae   :  { %v473_v44 = vadd.f32 %v664_v43, %v518_v34  ;;  %v467_v45 = vpop.f32.mrb[13].mxu0 }
 0x2af   :  { %v468_v46 = vadd.f32 %v518_v34, %v467_v45 }
 0x2b0   :  { %492 = vst.msk [vmem:[%s957_s5 + $0x28] sm:$0xff] %vm486_vm4, %v473_v44 }
 0x2b1   :  { %491 = vst.msk [vmem:[%s957_s5 + $0x20] sm:$0xff] %vm486_vm4, %v468_v46  ;;  %v667_v47 = vpop.f32.mrb[14].mxu0 }
 0x2b2   :  { %v483_v48 = vadd.f32 %v667_v47, %v518_v34  ;;  %v477_v49 = vpop.f32.mrb[15].mxu0 }
 0x2b3   :  { %v478_v50 = vadd.f32 %v518_v34, %v477_v49 }
 0x2b4   :  { %494 = vst.msk [vmem:[%s957_s5 + $0x38] sm:$0xff] %vm486_vm4, %v483_v48 }
 0x2b5   :  { %493 = vst.msk [vmem:[%s957_s5 + $0x30] sm:$0xff] %vm486_vm4, %v478_v50 }

</bundles_post_ra>
